<compile_context>
chip_gen: v7x
topology: tpu7x:2x2x1
jax: 0.10.0
libtpu: 0.0.40
codegen_flags: <defaults>
</compile_context>

<pallas_src>
import jax
import jax.numpy as jnp
from jax.experimental import pallas as pl
from jax.experimental.pallas import tpu as pltpu

_LANE = 128
_SUBLANE = 8
_H1, _H2 = 400, 300                       # PyTorch hidden sizes
_H1_PAD = 512                             # round_up(400, 128)
_H2_PAD = 384                             # round_up(300, 128)


def _round_up(n, m):
    return pl.cdiv(n, m) * m


def _ddpg_actor_kernel(x_ref, w1_ref, b1_ref, w2_ref, b2_ref, w3_ref, b3_ref,
                       o_ref):
    # Layer 1: Linear(obs, 400) + ReLU   (bf16 matmul, f32 accumulate)
    h1 = jnp.dot(x_ref[...], w1_ref[...], preferred_element_type=jnp.float32)
    h1 = jnp.maximum(h1 + b1_ref[...], 0.0)
    # Layer 2: Linear(400, 300) + ReLU
    h2 = jnp.dot(h1.astype(jnp.bfloat16), w2_ref[...],
                 preferred_element_type=jnp.float32)
    h2 = jnp.maximum(h2 + b2_ref[...], 0.0)
    # Layer 3: Linear(300, act) + Tanh
    h3 = jnp.dot(h2.astype(jnp.bfloat16), w3_ref[...],
                 preferred_element_type=jnp.float32)
    o_ref[...] = jnp.tanh(h3 + b3_ref[...])


def ddpg_actor_forward(x, params, *, batch_tile=128):
    """Full actor MLP in a single Pallas call, tiled over the batch."""
    w1, b1, w2, b2, w3, b3 = params
    B, obs = x.shape
    act = w3.shape[1]

    obs_p = _round_up(obs, _LANE)
    act_p = _round_up(act, _LANE)

    # Batch padding / tile size: at least a sublane multiple; if larger than
    # one tile, round up to a whole number of tiles.
    b_p = _round_up(B, _SUBLANE)
    if b_p <= batch_tile:
        tb = b_p
    else:
        tb = batch_tile
        b_p = _round_up(b_p, batch_tile)

    # Zero-pad (keeps math exact: padded input cols are 0, padded biases are 0
    # so padded hidden units stay 0 through ReLU) and cast matmul operands to
    # bf16; biases stay f32.
    x_p = jnp.pad(x, ((0, b_p - B), (0, obs_p - obs))).astype(jnp.bfloat16)
    w1_p = jnp.pad(w1, ((0, obs_p - obs), (0, _H1_PAD - _H1))).astype(jnp.bfloat16)
    b1_p = jnp.pad(b1, ((0, 0), (0, _H1_PAD - _H1)))
    w2_p = jnp.pad(w2, ((0, _H1_PAD - _H1), (0, _H2_PAD - _H2))).astype(jnp.bfloat16)
    b2_p = jnp.pad(b2, ((0, 0), (0, _H2_PAD - _H2)))
    w3_p = jnp.pad(w3, ((0, _H2_PAD - _H2), (0, act_p - act))).astype(jnp.bfloat16)
    b3_p = jnp.pad(b3, ((0, 0), (0, act_p - act)))

    resident = lambda arr: pl.BlockSpec(arr.shape, lambda i: (0,) * arr.ndim)

    out_p = pl.pallas_call(
        _ddpg_actor_kernel,
        out_shape=jax.ShapeDtypeStruct((b_p, act_p), jnp.float32),
        grid=(b_p // tb,),
        in_specs=[
            pl.BlockSpec((tb, obs_p), lambda i: (i, 0)),   # x: batch-tiled
            resident(w1_p), resident(b1_p),                # weights/biases stay
            resident(w2_p), resident(b2_p),                # resident in VMEM
            resident(w3_p), resident(b3_p),
        ],
        out_specs=pl.BlockSpec((tb, act_p), lambda i: (i, 0)),
        compiler_params=pltpu.CompilerParams(
            dimension_semantics=("parallel",)),
    )(x_p, w1_p, b1_p, w2_p, b2_p, w3_p, b3_p)

    return out_p[:B, :act]


def init_params(key, obs_size, act_size):
    """Deterministic init mirroring PyTorch nn.Linear defaults + the custom
    uniform_(-3e-3, 3e-3) on the final layer's weight."""
    k = jax.random.split(key, 6)

    def linear_init(kw, kb, fan_in, fan_out):
        bound = 1.0 / jnp.sqrt(fan_in)
        w = jax.random.uniform(kw, (fan_in, fan_out), jnp.float32, -bound, bound)
        b = jax.random.uniform(kb, (1, fan_out), jnp.float32, -bound, bound)
        return w, b

    w1, b1 = linear_init(k[0], k[1], obs_size, _H1)
    w2, b2 = linear_init(k[2], k[3], _H1, _H2)
    # Last layer: weight overridden to uniform(-0.003, 0.003); bias keeps default.
    w3 = jax.random.uniform(k[4], (_H2, act_size), jnp.float32, -0.003, 0.003)
    b_bound = 1.0 / jnp.sqrt(float(_H2))
    b3 = jax.random.uniform(k[5], (1, act_size), jnp.float32, -b_bound, b_bound)
    return w1, b1, w2, b2, w3, b3


def _reference(x, params):
    w1, b1, w2, b2, w3, b3 = params
    h1 = jnp.maximum(x @ w1 + b1, 0.0)
    h2 = jnp.maximum(h1 @ w2 + b2, 0.0)
    return jnp.tanh(h2 @ w3 + b3)


if __name__ == "__main__":
    obs_size, act_size, batch = 32, 8, 2

    key = jax.random.PRNGKey(0)
    k_params, k_x = jax.random.split(key)
    params = init_params(k_params, obs_size, act_size)
    x = jax.random.normal(k_x, (batch, obs_size), jnp.float32)

    out = ddpg_actor_forward(x, params)
    out = jax.block_until_ready(out)

    ref = _reference(x, params)
    assert out.shape == (batch, act_size)
    # bf16 matmuls with f32 accumulation -> relaxed tolerance vs f32 reference.
    assert jnp.allclose(out, ref, atol=1e-2, rtol=1e-2), "mismatch vs reference"

    print("KERNEL_OK")
</pallas_src>

<mosaic_0001>
module attributes {stable_mosaic.version = 11 : i64} {
  func.func @_ddpg_actor_kernel(%arg0: i32, %arg1: memref<8x128xbf16, #tpu.memory_space<vmem>>, %arg2: memref<128x512xbf16, #tpu.memory_space<vmem>>, %arg3: memref<1x512xf32, #tpu.memory_space<vmem>>, %arg4: memref<512x384xbf16, #tpu.memory_space<vmem>>, %arg5: memref<1x384xf32, #tpu.memory_space<vmem>>, %arg6: memref<384x128xbf16, #tpu.memory_space<vmem>>, %arg7: memref<1x128xf32, #tpu.memory_space<vmem>>, %arg8: memref<8x128xf32, #tpu.memory_space<vmem>>) attributes {dimension_semantics = [#tpu.dimension_semantics<parallel>], iteration_bounds = array<i64: 1>, scalar_prefetch = 0 : i64, scratch_operands = 0 : i64, tpu.core_type = #tpu.core_type<tc>, window_params = [{transform_indices = @transform_0, window_bounds = array<i64: 8, 128>}, {pipeline_mode = #tpu.pipeline_mode<synchronous>, transform_indices = @transform_1, window_bounds = array<i64: 128, 512>}, {pipeline_mode = #tpu.pipeline_mode<synchronous>, transform_indices = @transform_2, window_bounds = array<i64: 1, 512>}, {pipeline_mode = #tpu.pipeline_mode<synchronous>, transform_indices = @transform_3, window_bounds = array<i64: 512, 384>}, {pipeline_mode = #tpu.pipeline_mode<synchronous>, transform_indices = @transform_4, window_bounds = array<i64: 1, 384>}, {pipeline_mode = #tpu.pipeline_mode<synchronous>, transform_indices = @transform_5, window_bounds = array<i64: 384, 128>}, {pipeline_mode = #tpu.pipeline_mode<synchronous>, transform_indices = @transform_6, window_bounds = array<i64: 1, 128>}, {transform_indices = @transform_7, window_bounds = array<i64: 8, 128>}]} {
    %c0 = arith.constant 0 : index
    %c0_0 = arith.constant 0 : index
    %0 = vector.load %arg1[%c0, %c0_0] : memref<8x128xbf16, #tpu.memory_space<vmem>>, vector<8x128xbf16>
    %c0_1 = arith.constant 0 : index
    %c0_2 = arith.constant 0 : index
    %1 = vector.load %arg2[%c0_1, %c0_2] : memref<128x512xbf16, #tpu.memory_space<vmem>>, vector<128x512xbf16>
    %cst = arith.constant dense<0.000000e+00> : vector<8x512xf32>
    %2 = tpu.matmul %0, %1, %cst {dimension_numbers = #tpu.dot_dimension_numbers<[1], [0], [0], [1], [0, 0, 1, 1], [], []>} : vector<8x128xbf16>, vector<128x512xbf16>, vector<8x512xf32> -> vector<8x512xf32>
    %c0_3 = arith.constant 0 : index
    %c0_4 = arith.constant 0 : index
    %3 = vector.load %arg3[%c0_3, %c0_4] : memref<1x512xf32, #tpu.memory_space<vmem>>, vector<1x512xf32>
    %4 = vector.broadcast %3 : vector<1x512xf32> to vector<8x512xf32>
    %5 = arith.addf %2, %4 : vector<8x512xf32>
    %cst_5 = arith.constant 0.000000e+00 : f32
    %6 = vector.broadcast %cst_5 : f32 to vector<8x512xf32>
    %7 = arith.maximumf %5, %6 : vector<8x512xf32>
    %8 = arith.truncf %7 : vector<8x512xf32> to vector<8x512xbf16>
    %c0_6 = arith.constant 0 : index
    %c0_7 = arith.constant 0 : index
    %9 = vector.load %arg4[%c0_6, %c0_7] : memref<512x384xbf16, #tpu.memory_space<vmem>>, vector<512x384xbf16>
    %cst_8 = arith.constant dense<0.000000e+00> : vector<8x384xf32>
    %10 = tpu.matmul %8, %9, %cst_8 {dimension_numbers = #tpu.dot_dimension_numbers<[1], [0], [0], [1], [0, 0, 1, 1], [], []>} : vector<8x512xbf16>, vector<512x384xbf16>, vector<8x384xf32> -> vector<8x384xf32>
    %c0_9 = arith.constant 0 : index
    %c0_10 = arith.constant 0 : index
    %11 = vector.load %arg5[%c0_9, %c0_10] : memref<1x384xf32, #tpu.memory_space<vmem>>, vector<1x384xf32>
    %12 = vector.broadcast %11 : vector<1x384xf32> to vector<8x384xf32>
    %13 = arith.addf %10, %12 : vector<8x384xf32>
    %cst_11 = arith.constant 0.000000e+00 : f32
    %14 = vector.broadcast %cst_11 : f32 to vector<8x384xf32>
    %15 = arith.maximumf %13, %14 : vector<8x384xf32>
    %16 = arith.truncf %15 : vector<8x384xf32> to vector<8x384xbf16>
    %c0_12 = arith.constant 0 : index
    %c0_13 = arith.constant 0 : index
    %17 = vector.load %arg6[%c0_12, %c0_13] : memref<384x128xbf16, #tpu.memory_space<vmem>>, vector<384x128xbf16>
    %cst_14 = arith.constant dense<0.000000e+00> : vector<8x128xf32>
    %18 = tpu.matmul %16, %17, %cst_14 {dimension_numbers = #tpu.dot_dimension_numbers<[1], [0], [0], [1], [0, 0, 1, 1], [], []>} : vector<8x384xbf16>, vector<384x128xbf16>, vector<8x128xf32> -> vector<8x128xf32>
    %c0_15 = arith.constant 0 : index
    %c0_16 = arith.constant 0 : index
    %19 = vector.load %arg7[%c0_15, %c0_16] : memref<1x128xf32, #tpu.memory_space<vmem>>, vector<1x128xf32>
    %20 = vector.broadcast %19 : vector<1x128xf32> to vector<8x128xf32>
    %21 = arith.addf %18, %20 : vector<8x128xf32>
    %22 = math.tanh %21 : vector<8x128xf32>
    %c0_17 = arith.constant 0 : index
    %c0_18 = arith.constant 0 : index
    %23 = vector.load %arg8[%c0_17, %c0_18] : memref<8x128xf32, #tpu.memory_space<vmem>>, vector<8x128xf32>
    tpu.vector_store %arg8[%c0_17, %c0_18], %22 {strides = array<i32>} : memref<8x128xf32, #tpu.memory_space<vmem>>, vector<8x128xf32>,
    return
  }
  func.func @transform_0(%arg0: i32) -> (i32, i32) {
    %c0_i32 = arith.constant 0 : i32
    %c0_i32_0 = arith.constant 0 : i32
    return %arg0, %c0_i32 : i32, i32
  }
  func.func @transform_1(%arg0: i32) -> (i32, i32) {
    %c0_i32 = arith.constant 0 : i32
    %c0_i32_0 = arith.constant 0 : i32
    %c0_i32_1 = arith.constant 0 : i32
    return %c0_i32, %c0_i32_0 : i32, i32
  }
  func.func @transform_2(%arg0: i32) -> (i32, i32) {
    %c0_i32 = arith.constant 0 : i32
    %c0_i32_0 = arith.constant 0 : i32
    %c0_i32_1 = arith.constant 0 : i32
    return %c0_i32, %c0_i32_0 : i32, i32
  }
  func.func @transform_3(%arg0: i32) -> (i32, i32) {
    %c0_i32 = arith.constant 0 : i32
    %c0_i32_0 = arith.constant 0 : i32
    %c0_i32_1 = arith.constant 0 : i32
    return %c0_i32, %c0_i32_0 : i32, i32
  }
  func.func @transform_4(%arg0: i32) -> (i32, i32) {
    %c0_i32 = arith.constant 0 : i32
    %c0_i32_0 = arith.constant 0 : i32
    %c0_i32_1 = arith.constant 0 : i32
    return %c0_i32, %c0_i32_0 : i32, i32
  }
  func.func @transform_5(%arg0: i32) -> (i32, i32) {
    %c0_i32 = arith.constant 0 : i32
    %c0_i32_0 = arith.constant 0 : i32
    %c0_i32_1 = arith.constant 0 : i32
    return %c0_i32, %c0_i32_0 : i32, i32
  }
  func.func @transform_6(%arg0: i32) -> (i32, i32) {
    %c0_i32 = arith.constant 0 : i32
    %c0_i32_0 = arith.constant 0 : i32
    %c0_i32_1 = arith.constant 0 : i32
    return %c0_i32, %c0_i32_0 : i32, i32
  }
  func.func @transform_7(%arg0: i32) -> (i32, i32) {
    %c0_i32 = arith.constant 0 : i32
    %c0_i32_0 = arith.constant 0 : i32
    return %arg0, %c0_i32 : i32, i32
  }
}

</mosaic_0001>

<bundles_post_ra>
// kernel: tpu_custom_call.1
= control target key start
LH: loop header
LB: loop body
LE: loop exit
PB: predicated region body
PF: predicated region fallthrough
CT: control target
= control target key end

     0   :  { %12 = vsyncpa [#allocation3], 0  ;;  %s2244_s0 = inlined_call_operand.hbm [shape: bf16[8,128], index: 0, kind: input, shape index: {}]   ;;  %s2245_s1 = inlined_call_operand.hbm [shape: bf16[128,512], index: 1, kind: input, shape index: {}]   ;;  %s2246_s2 = inlined_call_operand.vmem [shape: f32[1,512], index: 2, kind: input, shape index: {}]   ;;  %s2247_s3 = inlined_call_operand.hbm [shape: bf16[512,384], index: 3, kind: input, shape index: {}]   ;;  %s2248_s4 = inlined_call_operand.vmem [shape: f32[1,384], index: 4, kind: input, shape index: {}]   ;;  %s2249_s5 = inlined_call_operand.hbm [shape: bf16[384,128], index: 5, kind: input, shape index: {}]   ;;  %s2250_s6 = inlined_call_operand.vmem [shape: f32[1,128], index: 6, kind: input, shape index: {}]   ;;  %s2251_s7 = inlined_call_operand.hbm [shape: f32[8,128], index: 7, kind: output, shape index: {}]  }
   0x1   :  { %13 = vsyncpa [#allocation6], 0 }
   0x2   :  { %14 = vsyncpa [#allocation9], 0 }
   0x3   :  { %15 = vsyncpa [#allocation4], 0  ;;  %s2097_s24 = smov [#allocation5]   ;;  %s1979_s28 = scalar_lea.hbm %s2245_s1, 4096 }
   0x4   :  { %s31_s25 = sshll.u32 %s2097_s24, 4  ;;  %p1980_p0 = scmp.ne.s32.totalorder %s2245_s1, %s1979_s28  ;;  %s32_s25 = int_to_ptr.vmem [resolvable:$true] %s31_s25 }
   0x5   :  { %p1983_p1 = scmp.lt.u32.totalorder %s1979_s28, %s2245_s1 }
   0x7   :  { %p1985_p2 = pnand %p1983_p1, %p1980_p0 }
   0x9   :  { %1988 = shalt.err (!%p1985_p2)
}
   0xa   :  { %s1989_s10 = scalar_lea.vmem %s32_s25, 4096  ;;  %p1994_p4 = scmp.lt.s32.totalorder %s32_s25, %s32_s25 }
   0xb   :  { %p1990_p3 = scmp.ne.s32.totalorder %s32_s25, %s1989_s10  ;;  %p1995_p5 = scmp.lt.s32.totalorder %s1989_s10, %s1989_s10 }
   0xd   :  { %p1996_p6 = por %p1995_p5, %p1994_p4 }
   0xf   :  { %p1997_p7 = pnand %p1996_p6, %p1990_p3 }
  0x11   :  { %2000 = shalt.err (!%p1997_p7)
}
  0x12   :  { %s2098_s11 = smov 256   ;;  %s2099_s12 = smov 16  }
  0x13   :  { %37 = dma.hbm_to_vmem [thread:$0]  %s2245_s1, 4096, %s32_s25, [#allocation6], %s2098_s11, %s2098_s11, %s2099_s12  }
  0x14   :  { %s2100_s15 = smov [#allocation2]   ;;  %s2101_s17 = smov [#allocation7]  }
  0x15   :  { %s22_s16 = sshll.u32 %s2100_s15, 4  ;;  %s45_s18 = sshll.u32 %s2101_s17, 4  ;;  %s23_s16 = int_to_ptr.vmem [resolvable:$true] %s22_s16  ;;  %s46_s18 = int_to_ptr.vmem [resolvable:$true] %s45_s18 }
  0x16   :  { %s2001_s21 = scalar_lea.hbm %s2244_s0, 64 }
  0x17   :  { %p2002_p8 = scmp.ne.s32.totalorder %s2244_s0, %s2001_s21  ;;  %p2005_p9 = scmp.lt.u32.totalorder %s2001_s21, %s2244_s0 }
  0x19   :  { %p2007_p10 = pnand %p2005_p9, %p2002_p8 }
  0x1b   :  { %2010 = shalt.err (!%p2007_p10)
}
  0x1c   :  { %s2011_s1 = scalar_lea.vmem %s23_s16, 64  ;;  %p2016_p12 = scmp.lt.s32.totalorder %s23_s16, %s23_s16 }
  0x1d   :  { %p2012_p11 = scmp.ne.s32.totalorder %s23_s16, %s2011_s1  ;;  %p2017_p13 = scmp.lt.s32.totalorder %s2011_s1, %s2011_s1 }
  0x1f   :  { %p2018_p0 = por %p2017_p13, %p2016_p12 }
  0x21   :  { %p2019_p1 = pnand %p2018_p0, %p2012_p11 }
  0x23   :  { %2022 = shalt.err (!%p2019_p1)
}
  0x24   :  { %25 = dma.hbm_to_vmem [thread:$0]  %s2244_s0, 64, %s23_s16, [#allocation3]  }
  0x25   :  { %s2023_s30 = scalar_lea.hbm %s2247_s3, 12288 }
  0x26   :  { %p2024_p2 = scmp.ne.s32.totalorder %s2247_s3, %s2023_s30  ;;  %p2027_p3 = scmp.lt.u32.totalorder %s2023_s30, %s2247_s3 }
  0x28   :  { %p2029_p4 = pnand %p2027_p3, %p2024_p2 }
  0x2a   :  { %2032 = shalt.err (!%p2029_p4)
}
  0x2b   :  { %s2033_s12 = scalar_lea.vmem %s46_s18, 12288  ;;  %p2038_p6 = scmp.lt.s32.totalorder %s46_s18, %s46_s18 }
  0x2c   :  { %p2034_p5 = scmp.ne.s32.totalorder %s46_s18, %s2033_s12  ;;  %p2039_p7 = scmp.lt.s32.totalorder %s2033_s12, %s2033_s12 }
  0x2e   :  { %p2040_p8 = por %p2039_p7, %p2038_p6 }
  0x30   :  { %p2041_p9 = pnand %p2040_p8, %p2034_p5 }
  0x32   :  { %2044 = shalt.err (!%p2041_p9)
}
  0x33   :  { %s2102_s0 = smov 192   ;;  %s2103_s13 = smov 12  }
  0x34   :  { %51 = dma.hbm_to_vmem [thread:$0]  %s2247_s3, 12288, %s46_s18, [#allocation6], %s2102_s0, %s2102_s0, %s2103_s13  }
  0x35   :  { %s2104_s16 = smov [#allocation8]   ;;  %s2045_s21 = scalar_lea.hbm %s2249_s5, 3072 }
  0x36   :  { %s59_s17 = sshll.u32 %s2104_s16, 4  ;;  %p2046_p10 = scmp.ne.s32.totalorder %s2249_s5, %s2045_s21  ;;  %s60_s17 = int_to_ptr.vmem [resolvable:$true] %s59_s17 }
  0x37   :  { %p2049_p11 = scmp.lt.u32.totalorder %s2045_s21, %s2249_s5 }
  0x39   :  { %p2051_p12 = pnand %p2049_p11, %p2046_p10 }
  0x3b   :  { %2054 = shalt.err (!%p2051_p12)
}
  0x3c   :  { %s2055_s1 = scalar_lea.vmem %s60_s17, 3072  ;;  %p2060_p0 = scmp.lt.s32.totalorder %s60_s17, %s60_s17 }
  0x3d   :  { %p2056_p13 = scmp.ne.s32.totalorder %s60_s17, %s2055_s1  ;;  %p2061_p1 = scmp.lt.s32.totalorder %s2055_s1, %s2055_s1 }
  0x3f   :  { %p2062_p2 = por %p2061_p1, %p2060_p0 }
  0x41   :  { %p2063_p3 = pnand %p2062_p2, %p2056_p13 }
  0x43   :  { %2066 = shalt.err (!%p2063_p3)
}
  0x44   :  { %s2105_s3 = smov 64   ;;  %s2106_s18 = smov 4  }
  0x45   :  { %65 = dma.hbm_to_vmem [thread:$0]  %s2249_s5, 3072, %s60_s17, [#allocation9], %s2105_s3, %s2105_s3, %s2106_s18  }
  0x46   :  { %2089 = dma.done.wait [#allocation3], 64  }
  0x47   :  { %2090 = vsyncadd [#allocation3], 4294967232 }
  0x48   :  { %2091 = dma.done.wait [#allocation6], 16384  }
  0x49   :  { %2092 = vsyncadd [#allocation6], 4294950912 }
  0x4a   :  { %2093 = dma.done.wait [#allocation9], 3072  }
  0x4b   :  { %2094 = vsyncadd [#allocation9], 4294964224  ;;  %v2107_v0 = vmov 0   ;;  %v1777_v1 = vld [vmem:[#allocation5 + $0x4] ss:$16 sps:$4 sm:$0xff]   ;;  %vm2109_vm0 = vmmov 0  }
  0x4c   :  { %328 = vmatprep.mubr.bf16.mxu0 %v2107_v0  ;;  %369 = vmatprep.mubr.bf16.mxu1 %v2107_v0  ;;  %v1779_v2 = vld [vmem:[#allocation5] ss:$16 sps:$4 sm:$0xff]   ;;  %v1780_v3 = vld [vmem:[#allocation5 + $0x24] ss:$16 sps:$4 sm:$0xff]   ;;  %v1801_v10 = vld [vmem:[#allocation5 + $0xc] ss:$16 sps:$4 sm:$0xff]  }
  0x4d   :  { %296 = vmatprep.subr.bf16.mxu0 %v1777_v1  ;;  %v1782_v4 = vld [vmem:[#allocation5 + $0x20] ss:$16 sps:$4 sm:$0xff]   ;;  %v1783_v5 = vld [vmem:[#allocation5 + $0x44] ss:$16 sps:$4 sm:$0xff]   ;;  %v1803_v11 = vld [vmem:[#allocation5 + $0x8] ss:$16 sps:$4 sm:$0xff]   ;;  %337 = vmatprep.subr.bf16.mxu1 %v1801_v10 }
  0x4e   :  { %297 = vmatpush1.bf16.msra.mxu0 %v1779_v2  ;;  %v1785_v6 = vld [vmem:[#allocation5 + $0x40] ss:$16 sps:$4 sm:$0xff]   ;;  %v1786_v7 = vld [vmem:[#allocation5 + $0x64] ss:$16 sps:$4 sm:$0xff]   ;;  %v1804_v12 = vld [vmem:[#allocation5 + $0x2c] ss:$16 sps:$4 sm:$0xff]   ;;  %338 = vmatpush1.bf16.msra.mxu1 %v1803_v11 }
  0x4f   :  { %298 = vmatprep.subr.bf16.mxu0 %v1780_v3  ;;  %v1788_v8 = vld [vmem:[#allocation5 + $0x60] ss:$16 sps:$4 sm:$0xff]   ;;  %v1789_v9 = vld [vmem:[#allocation5 + $0x84] ss:$16 sps:$4 sm:$0xff]   ;;  %v1806_v14 = vld [vmem:[#allocation5 + $0x28] ss:$16 sps:$4 sm:$0xff]   ;;  %339 = vmatprep.subr.bf16.mxu1 %v1804_v12 }
  0x50   :  { %v1791_v13 = vld [vmem:[#allocation5 + $0x80] ss:$16 sps:$4 sm:$0xff]   ;;  %v1807_v15 = vld [vmem:[#allocation5 + $0x4c] ss:$16 sps:$4 sm:$0xff]   ;;  %v1792_v16 = vld [vmem:[#allocation5 + $0xa4] ss:$16 sps:$4 sm:$0xff]  }
  0x51   :  { %v1794_v17 = vld [vmem:[#allocation5 + $0xa0] ss:$16 sps:$4 sm:$0xff]   ;;  %v1809_v18 = vld [vmem:[#allocation5 + $0x48] ss:$16 sps:$4 sm:$0xff]   ;;  %v1810_v19 = vld [vmem:[#allocation5 + $0x6c] ss:$16 sps:$4 sm:$0xff]  }
  0x52   :  { %299 = vmatpush1.bf16.msra.mxu0 %v1782_v4  ;;  %340 = vmatpush1.bf16.msra.mxu1 %v1806_v14  ;;  %v1795_v20 = vld [vmem:[#allocation5 + $0xc4] ss:$16 sps:$4 sm:$0xff]   ;;  %v1797_v21 = vld [vmem:[#allocation5 + $0xc0] ss:$16 sps:$4 sm:$0xff]   ;;  %v1812_v22 = vld [vmem:[#allocation5 + $0x68] ss:$16 sps:$4 sm:$0xff]  }
  0x53   :  { %300 = vmatprep.subr.bf16.mxu0 %v1783_v5  ;;  %341 = vmatprep.subr.bf16.mxu1 %v1807_v15  ;;  %v1813_v23 = vld [vmem:[#allocation5 + $0x8c] ss:$16 sps:$4 sm:$0xff]   ;;  %v1798_v24 = vld [vmem:[#allocation5 + $0xe4] ss:$16 sps:$4 sm:$0xff]   ;;  %v1800_v25 = vld [vmem:[#allocation5 + $0xe0] ss:$16 sps:$4 sm:$0xff]  }
  0x54   :  { %v1815_v26 = vld [vmem:[#allocation5 + $0x88] ss:$16 sps:$4 sm:$0xff]   ;;  %v1816_v27 = vld [vmem:[#allocation5 + $0xac] ss:$16 sps:$4 sm:$0xff]   ;;  %v1827_v28 = vld [vmem:[#allocation7 + $0x4] ss:$12 sps:$4 sm:$0xff]  }
  0x55   :  { %v81_v29 = vld [vmem:[#allocation2] sm:$0xf]  ;;  %v1818_v30 = vld [vmem:[#allocation5 + $0xa8] ss:$16 sps:$4 sm:$0xff]   ;;  %v1825_v32 = vld [vmem:[#allocation7] ss:$12 sps:$4 sm:$0xff]  }
  0x56   :  { %301 = vmatpush1.bf16.msra.mxu0 %v1785_v6  ;;  %342 = vmatpush1.bf16.msra.mxu1 %v1809_v18  ;;  %v1819_v31 = vld [vmem:[#allocation5 + $0xcc] ss:$16 sps:$4 sm:$0xff]   ;;  %v1821_v34 = vld [vmem:[#allocation5 + $0xc8] ss:$16 sps:$4 sm:$0xff]   ;;  %v1833_v37 = vld [vmem:[#allocation7 + $0x34] ss:$12 sps:$4 sm:$0xff]  }
  0x57   :  { %302 = vmatprep.subr.bf16.mxu0 %v1786_v7  ;;  %343 = vmatprep.subr.bf16.mxu1 %v1810_v19  ;;  %v1830_v33 = vld [vmem:[#allocation7 + $0x1c] ss:$12 sps:$4 sm:$0xff]   ;;  %v1828_v36 = vld [vmem:[#allocation7 + $0x18] ss:$12 sps:$4 sm:$0xff]   ;;  %v1857_v44 = vld [vmem:[#allocation7 + $0xe0] ss:$12 sps:$4 sm:$0xff]  }
  0x58   :  { %v1822_v35 = vld [vmem:[#allocation5 + $0xec] ss:$16 sps:$4 sm:$0xff]   ;;  %v1824_v38 = vld [vmem:[#allocation5 + $0xe8] ss:$16 sps:$4 sm:$0xff]   ;;  %v1839_v45 = vld [vmem:[#allocation7 + $0x64] ss:$12 sps:$4 sm:$0xff]  }
  0x59   :  { %v1831_v39 = vld [vmem:[#allocation7 + $0x30] ss:$12 sps:$4 sm:$0xff]   ;;  %v1852_v40 = vld [vmem:[#allocation7 + $0xc8] ss:$12 sps:$4 sm:$0xff]   ;;  %v1836_v41 = vld [vmem:[#allocation7 + $0x4c] ss:$12 sps:$4 sm:$0xff]  }
  0x5a   :  { %303 = vmatpush1.bf16.msra.mxu0 %v1788_v8  ;;  %344 = vmatpush1.bf16.msra.mxu1 %v1812_v22  ;;  %v1853_v42 = vld [vmem:[#allocation7 + $0x8] ss:$12 sps:$4 sm:$0xff]   ;;  %v1837_v46 = vld [vmem:[#allocation7 + $0x60] ss:$12 sps:$4 sm:$0xff]   ;;  %v1862_v48 = vld [vmem:[#allocation7 + $0xf8] ss:$12 sps:$4 sm:$0xff]  }
  0x5b   :  { %304 = vmatprep.subr.bf16.mxu0 %v1789_v9  ;;  %345 = vmatprep.subr.bf16.mxu1 %v1813_v23  ;;  %v1834_v43 = vld [vmem:[#allocation7 + $0x48] ss:$12 sps:$4 sm:$0xff]   ;;  %v1858_v47 = vld [vmem:[#allocation7 + $0x20] ss:$12 sps:$4 sm:$0xff]   ;;  %v1840_v50 = vld [vmem:[#allocation7 + $0x78] ss:$12 sps:$4 sm:$0xff]  }
  0x5c   :  { %v1842_v49 = vld [vmem:[#allocation7 + $0x7c] ss:$12 sps:$4 sm:$0xff]   ;;  %v1863_v51 = vld [vmem:[#allocation7 + $0x38] ss:$12 sps:$4 sm:$0xff]   ;;  %v1845_v53 = vld [vmem:[#allocation7 + $0x94] ss:$12 sps:$4 sm:$0xff]  }
  0x5d   :  { %v1867_v52 = vld [vmem:[#allocation7 + $0x110] ss:$12 sps:$4 sm:$0xff]   ;;  %v1872_v56 = vld [vmem:[#allocation7 + $0x128] ss:$12 sps:$4 sm:$0xff]   ;;  %v1848_v57 = vld [vmem:[#allocation7 + $0xac] ss:$12 sps:$4 sm:$0xff]  }
  0x5e   :  { %305 = vmatpush1.bf16.msra.mxu0 %v1791_v13  ;;  %346 = vmatpush1.bf16.msra.mxu1 %v1815_v26  ;;  %v1868_v54 = vld [vmem:[#allocation7 + $0x50] ss:$12 sps:$4 sm:$0xff]   ;;  %v1873_v58 = vld [vmem:[#allocation7 + $0x68] ss:$12 sps:$4 sm:$0xff]   ;;  %v1877_v60 = vld [vmem:[#allocation7 + $0x140] ss:$12 sps:$4 sm:$0xff]  }
  0x5f   :  { %306 = vmatprep.subr.bf16.mxu0 %v1792_v16  ;;  %347 = vmatprep.subr.bf16.mxu1 %v1816_v27  ;;  %v1843_v55 = vld [vmem:[#allocation7 + $0x90] ss:$12 sps:$4 sm:$0xff]   ;;  %v1846_v59 = vld [vmem:[#allocation7 + $0xa8] ss:$12 sps:$4 sm:$0xff]   ;;  %v1878_v62 = vld [vmem:[#allocation7 + $0x80] ss:$12 sps:$4 sm:$0xff]  }
  0x60   :  { %v1851_v61 = vld [vmem:[#allocation7 + $0xc4] ss:$12 sps:$4 sm:$0xff]   ;;  %v1849_v63 = vld [vmem:[#allocation7 + $0xc0] ss:$12 sps:$4 sm:$0xff]   ;;  %v1856_v0 = vld [vmem:[#allocation7 + $0xdc] ss:$12 sps:$4 sm:$0xff]  }
  0x61   :  { %v1854_v1 = vld [vmem:[#allocation7 + $0xd8] ss:$12 sps:$4 sm:$0xff]   ;;  %v1861_v2 = vld [vmem:[#allocation7 + $0xf4] ss:$12 sps:$4 sm:$0xff]   ;;  %v1859_v3 = vld [vmem:[#allocation7 + $0xf0] ss:$12 sps:$4 sm:$0xff]  }
  0x62   :  { %307 = vmatpush1.bf16.msra.mxu0 %v1794_v17  ;;  %348 = vmatpush1.bf16.msra.mxu1 %v1818_v30  ;;  %v1866_v4 = vld [vmem:[#allocation7 + $0x10c] ss:$12 sps:$4 sm:$0xff]   ;;  %v1864_v5 = vld [vmem:[#allocation7 + $0x108] ss:$12 sps:$4 sm:$0xff]   ;;  %v1871_v6 = vld [vmem:[#allocation7 + $0x124] ss:$12 sps:$4 sm:$0xff]  }
  0x63   :  { %308 = vmatprep.subr.bf16.mxu0 %v1795_v20  ;;  %349 = vmatprep.subr.bf16.mxu1 %v1819_v31  ;;  %v1869_v7 = vld [vmem:[#allocation7 + $0x120] ss:$12 sps:$4 sm:$0xff]   ;;  %v1876_v8 = vld [vmem:[#allocation7 + $0x13c] ss:$12 sps:$4 sm:$0xff]   ;;  %v1874_v9 = vld [vmem:[#allocation7 + $0x138] ss:$12 sps:$4 sm:$0xff]   ;;  %v116_v20 = vlaneseq }
  0x64   :  { %v1881_v10 = vld [vmem:[#allocation7 + $0x154] ss:$12 sps:$4 sm:$0xff]   ;;  %v1882_v11 = vld [vmem:[#allocation7 + $0x158] ss:$12 sps:$4 sm:$0xff]   ;;  %v1879_v12 = vld [vmem:[#allocation7 + $0x150] ss:$12 sps:$4 sm:$0xff]  }
  0x65   :  { %v1883_v13 = vld [vmem:[#allocation7 + $0x98] ss:$12 sps:$4 sm:$0xff]   ;;  %v1887_v15 = vld [vmem:[#allocation7 + $0x170] ss:$12 sps:$4 sm:$0xff]   ;;  %v1884_v16 = vld [vmem:[#allocation7 + $0x168] ss:$12 sps:$4 sm:$0xff]  }
  0x66   :  { %309 = vmatpush1.bf16.msra.mxu0 %v1797_v21  ;;  %350 = vmatpush1.bf16.msra.mxu1 %v1821_v34  ;;  %v1886_v14 = vld [vmem:[#allocation7 + $0x16c] ss:$12 sps:$4 sm:$0xff]   ;;  %v1888_v17 = vld [vmem:[#allocation7 + $0xb0] ss:$12 sps:$4 sm:$0xff]   ;;  %v1892_v19 = vld [vmem:[#allocation7 + $0x248] ss:$12 sps:$4 sm:$0xff]  }
  0x67   :  { %310 = vmatprep.subr.bf16.mxu0 %v1798_v24  ;;  %351 = vmatprep.subr.bf16.mxu1 %v1822_v35  ;;  %v1891_v18 = vld [vmem:[#allocation7 + $0x184] ss:$12 sps:$4 sm:$0xff]   ;;  %v2199_v21 = vshrl.u32 %v116_v20, 7  ;;  %v2205_v23 = vld [vmem:[%s2246_s2] sm:$0xf]  ;;  %s2110_s8 = smov [#allocation10]  }
  0x68   :  { %v1932_v20 = vld [vmem:[#allocation7 + $0x258] ss:$12 sps:$4 sm:$0xff]   ;;  %s1498_s9 = sshll.u32 %s2110_s8, 4  ;;  %s1499_s9 = int_to_ptr.vmem [resolvable:$true] %s1498_s9 }
  0x69   :  { %v118_v22 = vsub.s32 0, %v2199_v21  ;;  %v122_v24 = vsub.s32 1, %v2199_v21  ;;  %v130_v35 = vsub.s32 3, %v2199_v21  ;;  %s2067_s10 = scalar_lea.vmem %s1499_s9, 128  ;;  %p2072_p5 = scmp.lt.s32.totalorder %s1499_s9, %s1499_s9 }
  0x6a   :  { %311 = vmatpush1.bf16.msra.mxu0 %v1800_v25  ;;  %352 = vmatpush1.bf16.msra.mxu1 %v1824_v38  ;;  %v1893_v38 = vld [vmem:[#allocation7 + $0x188] ss:$12 sps:$4 sm:$0xff]   ;;  %p2068_p4 = scmp.ne.s32.totalorder %s1499_s9, %s2067_s10  ;;  %p2073_p6 = scmp.lt.s32.totalorder %s2067_s10, %s2067_s10 }
  0x6b   :  { %1043 = vmatprep.subr.bf16.mxu0 %v1827_v28  ;;  %1662 = vmatprep.subr.bf16.mxu1 %v1852_v40  ;;  %v119_v25 = vrot.slane %v2205_v23, %v118_v22  ;;  %v123_v26 = vrot.slane %v2205_v23, %v122_v24  ;;  %v1896_v40 = vld [vmem:[#allocation7 + $0x19c] ss:$12 sps:$4 sm:$0xff]  }
  0x6c   :  { %p2074_p7 = por %p2073_p6, %p2072_p5 }
  0x6d   :  { %329 = vmatmul.mubr.bf16.vlgmr.msra.gmra.mrb[0].mxu0 %v81_v29  ;;  %370 = vmatmul.mubr.bf16.vlgmr.msra.gmra.mrb[0].mxu1 %v81_v29 }
  0x6e   :  { %1044 = vmatpush1.bf16.msra.mxu0 %v1825_v32  ;;  %1663 = vmatpush3.bf16.msra.mxu1 %v1853_v42  ;;  %v131_v42 = vrot.slane %v2205_v23, %v130_v35  ;;  %v1950_v35 = vld [vmem:[#allocation7 + $0x2e8] ss:$12 sps:$4 sm:$0xff]   ;;  %p2075_p8 = pnand %p2074_p7, %p2068_p4 }
  0x6f   :  { %1045 = vmatprep.subr.bf16.mxu0 %v1830_v33  ;;  %1664 = vmatprep.subr.bf16.mxu1 %v1857_v44  ;;  %v1898_v44 = vld [vmem:[#allocation7 + $0x1a0] ss:$12 sps:$4 sm:$0xff]  }
  0x72   :  { %1046 = vmatpush1.bf16.msra.mxu0 %v1828_v36  ;;  %1665 = vmatpush3.bf16.msra.mxu1 %v1858_v47 }
  0x73   :  { %1047 = vmatprep.subr.bf16.mxu0 %v1833_v37  ;;  %1666 = vmatprep.subr.bf16.mxu1 %v1862_v48  ;;  %v1889_v37 = vld [vmem:[#allocation7 + $0x180] ss:$12 sps:$4 sm:$0xff]  }
  0x76   :  { %1048 = vmatpush1.bf16.msra.mxu0 %v1831_v39  ;;  %1667 = vmatpush3.bf16.msra.mxu1 %v1863_v51  ;;  %v1899_v51 = vld [vmem:[#allocation7 + $0x1b0] ss:$12 sps:$4 sm:$0xff]  }
  0x77   :  { %1049 = vmatprep.subr.bf16.mxu0 %v1836_v41  ;;  %1668 = vmatprep.subr.bf16.mxu1 %v1867_v52  ;;  %v1897_v41 = vld [vmem:[#allocation7 + $0x260] ss:$12 sps:$4 sm:$0xff]   ;;  %v1903_v52 = vld [vmem:[#allocation7 + $0x1b8] ss:$12 sps:$4 sm:$0xff]  }
  0x7a   :  { %1050 = vmatpush1.bf16.msra.mxu0 %v1834_v43  ;;  %1669 = vmatpush3.bf16.msra.mxu1 %v1868_v54  ;;  %v1894_v43 = vld [vmem:[#allocation7 + $0x198] ss:$12 sps:$4 sm:$0xff]  }
  0x7b   :  { %1051 = vmatprep.subr.bf16.mxu0 %v1839_v45  ;;  %1670 = vmatprep.subr.bf16.mxu1 %v1872_v56  ;;  %v1901_v45 = vld [vmem:[#allocation7 + $0x1b4] ss:$12 sps:$4 sm:$0xff]   ;;  %v1906_v54 = vld [vmem:[#allocation7 + $0x1cc] ss:$12 sps:$4 sm:$0xff]  }
  0x7e   :  { %1052 = vmatpush1.bf16.msra.mxu0 %v1837_v46  ;;  %1671 = vmatpush3.bf16.msra.mxu1 %v1873_v58  ;;  %v1902_v46 = vld [vmem:[#allocation7 + $0x278] ss:$12 sps:$4 sm:$0xff]   ;;  %v1904_v58 = vld [vmem:[#allocation7 + $0x1c8] ss:$12 sps:$4 sm:$0xff]  }
  0x7f   :  { %1053 = vmatprep.subr.bf16.mxu0 %v1842_v49  ;;  %1672 = vmatprep.subr.bf16.mxu1 %v1877_v60  ;;  %v1911_v60 = vld [vmem:[#allocation7 + $0x1e4] ss:$12 sps:$4 sm:$0xff]  }
  0x82   :  { %1054 = vmatpush1.bf16.msra.mxu0 %v1840_v50  ;;  %1673 = vmatpush3.bf16.msra.mxu1 %v1878_v62  ;;  %v126_v62 = vsub.s32 2, %v2199_v21  ;;  %v1971_v21 = vld [vmem:[#allocation8 + $0x90] sm:$0xff]  }
  0x83   :  { %1055 = vmatprep.subr.bf16.mxu0 %v1845_v53  ;;  %1674 = vmatprep.subr.bf16.mxu1 %v1882_v11  ;;  %v1926_v11 = vld [vmem:[#allocation7 + $0x22c] ss:$12 sps:$4 sm:$0xff]  }
  0x86   :  { %1056 = vmatpush1.bf16.msra.mxu0 %v1843_v55  ;;  %1675 = vmatpush3.bf16.msra.mxu1 %v1883_v13  ;;  %v1907_v55 = vld [vmem:[#allocation7 + $0x290] ss:$12 sps:$4 sm:$0xff]  }
  0x87   :  { %1057 = vmatprep.subr.bf16.mxu0 %v1848_v57  ;;  %1676 = vmatprep.subr.bf16.mxu1 %v1887_v15  ;;  %v1928_v15 = vld [vmem:[#allocation7 + $0x230] ss:$12 sps:$4 sm:$0xff]  }
  0x8a   :  { %1058 = vmatpush1.bf16.msra.mxu0 %v1846_v59  ;;  %1677 = vmatpush3.bf16.msra.mxu1 %v1888_v17  ;;  %v1908_v59 = vld [vmem:[#allocation7 + $0x1d0] ss:$12 sps:$4 sm:$0xff]  }
  0x8b   :  { %1059 = vmatprep.subr.bf16.mxu0 %v1851_v61  ;;  %1684 = vmatprep.subr.bf16.mxu1 %v1892_v19  ;;  %v1912_v61 = vld [vmem:[#allocation7 + $0x2a8] ss:$12 sps:$4 sm:$0xff]  }
  0x8c   :  { %v1934_v19 = vld [vmem:[#allocation7 + $0x25c] ss:$12 sps:$4 sm:$0xff]  }
  0x8e   :  { %1060 = vmatpush1.bf16.msra.mxu0 %v1849_v63  ;;  %v1909_v63 = vld [vmem:[#allocation7 + $0x1e0] ss:$12 sps:$4 sm:$0xff]  }
  0x8f   :  { %1061 = vmatprep.subr.bf16.mxu0 %v1856_v0  ;;  %v1913_v0 = vld [vmem:[#allocation7 + $0x1e8] ss:$12 sps:$4 sm:$0xff]  }
  0x92   :  { %1062 = vmatpush1.bf16.msra.mxu0 %v1854_v1  ;;  %v1916_v1 = vld [vmem:[#allocation7 + $0x1fc] ss:$12 sps:$4 sm:$0xff]  }
  0x93   :  { %1063 = vmatprep.subr.bf16.mxu0 %v1861_v2  ;;  %v1917_v2 = vld [vmem:[#allocation7 + $0x2c0] ss:$12 sps:$4 sm:$0xff]  }
  0x96   :  { %1064 = vmatpush1.bf16.msra.mxu0 %v1859_v3  ;;  %v127_v3 = vrot.slane %v2205_v23, %v126_v62  ;;  %v1937_v23 = vld [vmem:[#allocation7 + $0x274] ss:$12 sps:$4 sm:$0xff]  }
  0x97   :  { %1065 = vmatprep.subr.bf16.mxu0 %v1866_v4  ;;  %v1914_v4 = vld [vmem:[#allocation7 + $0x1f8] ss:$12 sps:$4 sm:$0xff]  }
  0x9a   :  { %1066 = vmatpush1.bf16.msra.mxu0 %v1864_v5  ;;  %v1918_v5 = vld [vmem:[#allocation7 + $0x200] ss:$12 sps:$4 sm:$0xff]  }
  0x9b   :  { %1067 = vmatprep.subr.bf16.mxu0 %v1871_v6  ;;  %v1921_v6 = vld [vmem:[#allocation7 + $0x214] ss:$12 sps:$4 sm:$0xff]  }
  0x9e   :  { %1068 = vmatpush1.bf16.msra.mxu0 %v1869_v7  ;;  %v1922_v7 = vld [vmem:[#allocation7 + $0x2d8] ss:$12 sps:$4 sm:$0xff]  }
  0x9f   :  { %1069 = vmatprep.subr.bf16.mxu0 %v1876_v8 }
  0xa2   :  { %1070 = vmatpush1.bf16.msra.mxu0 %v1874_v9  ;;  %v1919_v9 = vld [vmem:[#allocation7 + $0x210] ss:$12 sps:$4 sm:$0xff]  }
  0xa3   :  { %1071 = vmatprep.subr.bf16.mxu0 %v1881_v10  ;;  %v1923_v10 = vld [vmem:[#allocation7 + $0x218] ss:$12 sps:$4 sm:$0xff]  }
  0xa6   :  { %1072 = vmatpush1.bf16.msra.mxu0 %v1879_v12  ;;  %v1927_v12 = vld [vmem:[#allocation7 + $0x2f0] ss:$12 sps:$4 sm:$0xff]  }
  0xa7   :  { %1073 = vmatprep.subr.bf16.mxu0 %v1886_v14  ;;  %v1924_v14 = vld [vmem:[#allocation7 + $0x228] ss:$12 sps:$4 sm:$0xff]  }
  0xaa   :  { %1074 = vmatpush1.bf16.msra.mxu0 %v1884_v16  ;;  %v1931_v16 = vld [vmem:[#allocation7 + $0x244] ss:$12 sps:$4 sm:$0xff]  }
  0xab   :  { %1084 = vmatprep.subr.bf16.mxu0 %v1891_v18  ;;  %v1929_v18 = vld [vmem:[#allocation7 + $0x240] ss:$12 sps:$4 sm:$0xff]  }
 0x140   :  { %v330_v27 = vpop.f32.mrb[0].mxu0  ;;  %v371_v47 = vpop.f32.mrb[0].mxu1 }
 0x141   :  { %v331_v28 = vadd.f32 %v330_v27, %v119_v25  ;;  %v332_v29 = vpop.f32.mrb[1].mxu0  ;;  %v373_v48 = vpop.f32.mrb[1].mxu1  ;;  %v372_v8 = vadd.f32 %v371_v47, %v127_v3  ;;  %v1935_v25 = vld [vmem:[#allocation7 + $0x270] ss:$12 sps:$4 sm:$0xff]   ;;  %v1938_v27 = vld [vmem:[#allocation7 + $0x288] ss:$12 sps:$4 sm:$0xff]  }
 0x142   :  { %v333_v30 = vadd.f32 %v332_v29, %v123_v26  ;;  %v334_v31 = vpop.f32.mrb[2].mxu0  ;;  %v374_v49 = vadd.f32 %v373_v48, %v131_v42  ;;  %v375_v50 = vpop.f32.mrb[2].mxu1  ;;  %v1940_v26 = vld [vmem:[#allocation7 + $0x28c] ss:$12 sps:$4 sm:$0xff]   ;;  %v1965_v48 = vld [vmem:[#allocation8 + $0x70] sm:$0xff]  }
 0x143   :  { %v378_v32 = vmax.f32 %v331_v28, 0.0  ;;  %v335_v33 = vpop.f32.mrb[3].mxu0  ;;  %v376_v53 = vpop.f32.mrb[3].mxu1  ;;  %v380_v13 = vmax.f32 %v372_v8, 0.0  ;;  %v1943_v28 = vld [vmem:[#allocation7 + $0x2a4] ss:$12 sps:$4 sm:$0xff]  }
 0x144   :  { %v379_v34 = vmax.f32 %v333_v30, 0.0  ;;  %v381_v56 = vmax.f32 %v374_v49, 0.0  ;;  %v1941_v29 = vld [vmem:[#allocation7 + $0x2a0] ss:$12 sps:$4 sm:$0xff]   ;;  %v1946_v30 = vld [vmem:[#allocation7 + $0x2bc] ss:$12 sps:$4 sm:$0xff]  }
 0x145   :  { %v382_v39 = vpack.c.bf16 %v378_v32, %v378_v32  ;;  %v384_v17 = vpack.c.bf16 %v380_v13, %v380_v13  ;;  %v1944_v31 = vld [vmem:[#allocation7 + $0x2b8] ss:$12 sps:$4 sm:$0xff]   ;;  %v1949_v32 = vld [vmem:[#allocation7 + $0x2d4] ss:$12 sps:$4 sm:$0xff]   ;;  %v1947_v33 = vld [vmem:[#allocation7 + $0x2d0] ss:$12 sps:$4 sm:$0xff]  }
 0x146   :  { %v383_v36 = vpack.c.bf16 %v379_v34, %v379_v34  ;;  %v385_v57 = vpack.c.bf16 %v381_v56, %v381_v56  ;;  %v1952_v34 = vld [vmem:[#allocation7 + $0x2ec] ss:$12 sps:$4 sm:$0xff]   ;;  %v1966_v49 = vld [vmem:[#allocation8 + $0x30] sm:$0xff]  }
 0x147   :  { %v1959_v42 = vld [vmem:[#allocation8 + $0x58] sm:$0xff]   ;;  %v1964_v47 = vld [vmem:[#allocation8 + $0x28] sm:$0xff]  }
 0x148   :  { %1075 = vmatprep.mubr.bf16.mxu0 %v383_v36  ;;  %1157 = vmatprep.mubr.bf16.mxu1 %v383_v36  ;;  %v1953_v36 = vld [vmem:[#allocation8 + $0x40] sm:$0xff]   ;;  %v1967_v50 = vld [vmem:[#allocation8 + $0x78] sm:$0xff]  }
 0x149   :  { %1076 = vmatmul.mubr.bf16.vlgmr.msra.gmra.mrb[4].mxu0 %v382_v39  ;;  %1158 = vmatmul.mubr.bf16.vlgmr.msra.gmra.mrb[4].mxu1 %v382_v39  ;;  %v1956_v39 = vld [vmem:[#allocation8 + $0x8] sm:$0xff]  }
 0x14a   :  { %1085 = vmatpush1.bf16.msra.mxu0 %v1889_v37  ;;  %1685 = vmatpush3.bf16.msra.mxu1 %v1893_v38  ;;  %v1954_v37 = vld [vmem:[#allocation8] sm:$0xff]   ;;  %v1955_v38 = vld [vmem:[#allocation8 + $0x48] sm:$0xff]  }
 0x14b   :  { %1086 = vmatprep.subr.bf16.mxu0 %v1896_v40  ;;  %1686 = vmatprep.subr.bf16.mxu1 %v1897_v41  ;;  %v1957_v40 = vld [vmem:[#allocation8 + $0x50] sm:$0xff]  }
 0x14c   :  { %1197 = vmatprep.mubr.bf16.mxu1 %v385_v57  ;;  %1116 = vmatprep.mubr.bf16.mxu0 %v385_v57  ;;  %v1958_v41 = vld [vmem:[#allocation8 + $0x10] sm:$0xff]  }
 0x14e   :  { %1087 = vmatpush1.bf16.msra.mxu0 %v1894_v43  ;;  %1687 = vmatpush3.bf16.msra.mxu1 %v1898_v44  ;;  %v1960_v43 = vld [vmem:[#allocation8 + $0x18] sm:$0xff]   ;;  %v1961_v44 = vld [vmem:[#allocation8 + $0x60] sm:$0xff]  }
 0x14f   :  { %1088 = vmatprep.subr.bf16.mxu0 %v1901_v45  ;;  %1688 = vmatprep.subr.bf16.mxu1 %v1902_v46  ;;  %v1962_v45 = vld [vmem:[#allocation8 + $0x20] sm:$0xff]   ;;  %v1963_v46 = vld [vmem:[#allocation8 + $0x68] sm:$0xff]  }
 0x152   :  { %1089 = vmatpush1.bf16.msra.mxu0 %v1899_v51  ;;  %1689 = vmatpush3.bf16.msra.mxu1 %v1903_v52  ;;  %v1968_v51 = vld [vmem:[#allocation8 + $0x38] sm:$0xff]   ;;  %v2108_v52 = vmov 0.0  }
 0x153   :  { %1090 = vmatprep.subr.bf16.mxu0 %v1906_v54  ;;  %1690 = vmatprep.subr.bf16.mxu1 %v1907_v55 }
 0x156   :  { %1091 = vmatpush1.bf16.msra.mxu0 %v1904_v58  ;;  %1691 = vmatpush3.bf16.msra.mxu1 %v1908_v59  ;;  %v514_v58 = vld [vmem:[%s2248_s4] sm:$0x7] }
 0x157   :  { %1092 = vmatprep.subr.bf16.mxu0 %v1911_v60  ;;  %1692 = vmatprep.subr.bf16.mxu1 %v1912_v61  ;;  %v527_v59 = vrot.slane %v514_v58, %v126_v62 }
 0x15a   :  { %1093 = vmatpush1.bf16.msra.mxu0 %v1909_v63  ;;  %1693 = vmatpush3.bf16.msra.mxu1 %v1913_v0 }
 0x15b   :  { %1094 = vmatprep.subr.bf16.mxu0 %v1916_v1  ;;  %1694 = vmatprep.subr.bf16.mxu1 %v1917_v2 }
 0x15e   :  { %1095 = vmatpush1.bf16.msra.mxu0 %v1914_v4  ;;  %1695 = vmatpush3.bf16.msra.mxu1 %v1918_v5  ;;  %v519_v4 = vrot.slane %v514_v58, %v118_v22  ;;  %v523_v5 = vrot.slane %v514_v58, %v122_v24  ;;  %v1972_v22 = vld [vmem:[#allocation8 + $0x98] sm:$0xff]   ;;  %v1973_v24 = vld [vmem:[#allocation8 + $0xa0] sm:$0xff]  }
 0x15f   :  { %1096 = vmatprep.subr.bf16.mxu0 %v1921_v6  ;;  %1696 = vmatprep.subr.bf16.mxu1 %v1922_v7 }
 0x162   :  { %1097 = vmatpush1.bf16.msra.mxu0 %v1919_v9  ;;  %1697 = vmatpush3.bf16.msra.mxu1 %v1923_v10 }
 0x163   :  { %1098 = vmatprep.subr.bf16.mxu0 %v1926_v11  ;;  %1698 = vmatprep.subr.bf16.mxu1 %v1927_v12 }
 0x166   :  { %1099 = vmatpush1.bf16.msra.mxu0 %v1924_v14  ;;  %1699 = vmatpush3.bf16.msra.mxu1 %v1928_v15  ;;  %v1969_v14 = vld [vmem:[#allocation8 + $0x80] sm:$0xff]  }
 0x167   :  { %1100 = vmatprep.subr.bf16.mxu0 %v1931_v16  ;;  %1706 = vmatprep.subr.bf16.mxu1 %v1953_v36  ;;  %v1970_v16 = vld [vmem:[#allocation8 + $0x88] sm:$0xff]  }
 0x169   :  { %1198 = vmatmul.mubr.bf16.vlgmr.msra.gmra.mrb[8].mxu1 %v384_v17 }
 0x16a   :  { %1101 = vmatpush1.bf16.msra.mxu0 %v1929_v18  ;;  %1707 = vmatpush3.bf16.msra.mxu1 %v1954_v37  ;;  %v1975_v18 = vld [vmem:[#allocation8 + $0xb0] sm:$0xff]  }
 0x16b   :  { %1102 = vmatprep.subr.bf16.mxu0 %v1934_v19  ;;  %1708 = vmatprep.subr.bf16.mxu1 %v1955_v38  ;;  %v1976_v19 = vld [vmem:[#allocation8 + $0xb8] sm:$0xff]  }
 0x16e   :  { %1103 = vmatpush1.bf16.msra.mxu0 %v1932_v20  ;;  %1709 = vmatpush3.bf16.msra.mxu1 %v1956_v39 }
 0x16f   :  { %1104 = vmatprep.subr.bf16.mxu0 %v1937_v23  ;;  %1710 = vmatprep.subr.bf16.mxu1 %v1957_v40 }
 0x172   :  { %1105 = vmatpush1.bf16.msra.mxu0 %v1935_v25  ;;  %1711 = vmatpush3.bf16.msra.mxu1 %v1958_v41 }
 0x173   :  { %1106 = vmatprep.subr.bf16.mxu0 %v1940_v26  ;;  %1712 = vmatprep.subr.bf16.mxu1 %v1959_v42 }
 0x176   :  { %1107 = vmatpush1.bf16.msra.mxu0 %v1938_v27  ;;  %1713 = vmatpush3.bf16.msra.mxu1 %v1960_v43 }
 0x177   :  { %1108 = vmatprep.subr.bf16.mxu0 %v1943_v28  ;;  %1714 = vmatprep.subr.bf16.mxu1 %v1961_v44 }
 0x17a   :  { %1109 = vmatpush1.bf16.msra.mxu0 %v1941_v29  ;;  %1715 = vmatpush3.bf16.msra.mxu1 %v1962_v45 }
 0x17b   :  { %1110 = vmatprep.subr.bf16.mxu0 %v1946_v30  ;;  %1716 = vmatprep.subr.bf16.mxu1 %v1963_v46  ;;  %v1637_v30 = vld [vmem:[%s2250_s6] ss:$0 sm:$0xff] }
 0x17e   :  { %1111 = vmatpush1.bf16.msra.mxu0 %v1944_v31  ;;  %1717 = vmatpush3.bf16.msra.mxu1 %v1964_v47 }
 0x17f   :  { %1112 = vmatprep.subr.bf16.mxu0 %v1949_v32  ;;  %1718 = vmatprep.subr.bf16.mxu1 %v1965_v48 }
 0x182   :  { %1113 = vmatpush1.bf16.msra.mxu0 %v1947_v33  ;;  %1719 = vmatpush3.bf16.msra.mxu1 %v1966_v49 }
 0x183   :  { %1114 = vmatprep.subr.bf16.mxu0 %v1952_v34  ;;  %1720 = vmatprep.subr.bf16.mxu1 %v1967_v50 }
 0x186   :  { %1115 = vmatpush1.bf16.msra.mxu0 %v1950_v35  ;;  %1721 = vmatpush3.bf16.msra.mxu1 %v1968_v51 }
 0x187   :  { %1737 = vmatprep.subr.bf16.mxu1 %v2108_v52 }
 0x189   :  { %1117 = vmatmul.mubr.bf16.vlgmr.msra.gmra.mrb[4].mxu0 %v384_v17  ;;  %v1974_v17 = vld [vmem:[#allocation8 + $0xa8] sm:$0xff]  }
 0x21c   :  { %v1678_v53 = vpop.f32.mrb[4].mxu1 }
 0x21d   :  { %v1679_v54 = vpop.f32.mrb[5].mxu1 }
 0x21e   :  { %v1680_v55 = vadd.f32 %v1679_v54, %v1678_v53  ;;  %v1681_v56 = vpop.f32.mrb[6].mxu1 }
 0x21f   :  { %v1682_v57 = vpop.f32.mrb[7].mxu1 }
 0x220   :  { %v1160_v63 = vadd.f32 %v1680_v55, %v527_v59 }
 0x23c   :  { %v1700_v60 = vpop.f32.mrb[8].mxu1 }
 0x23d   :  { %v1701_v61 = vpop.f32.mrb[9].mxu1 }
 0x23e   :  { %v1702_v0 = vadd.f32 %v1701_v61, %v1700_v60  ;;  %v1703_v1 = vpop.f32.mrb[10].mxu1 }
 0x23f   :  { %v1704_v2 = vpop.f32.mrb[11].mxu1 }
 0x240   :  { %v1200_v3 = vadd.f32 %v1702_v0, %v1160_v63 }
 0x242   :  { %v1207_v20 = vmax.f32 %v1200_v3, 0.0 }
 0x244   :  { %v1210_v23 = vpack.c.bf16 %v1207_v20, %v1207_v20 }
 0x25c   :  { %v1118_v6 = vpop.f32.mrb[4].mxu0 }
 0x25d   :  { %v1757_v7 = vadd.f32 %v1118_v6, %v519_v4  ;;  %v1120_v8 = vpop.f32.mrb[5].mxu0 }
 0x25e   :  { %v1758_v9 = vadd.f32 %v1120_v8, %v523_v5  ;;  %v1122_v10 = vpop.f32.mrb[6].mxu0 }
 0x25f   :  { %v1205_v11 = vmax.f32 %v1757_v7, 0.0  ;;  %v1123_v62 = vpop.f32.mrb[7].mxu0 }
 0x260   :  { %v1206_v12 = vmax.f32 %v1758_v9, 0.0 }
 0x261   :  { %v1208_v15 = vpack.c.bf16 %v1205_v11, %v1205_v11 }
 0x262   :  { %v1209_v13 = vpack.c.bf16 %v1206_v12, %v1206_v12 }
 0x264   :  { %1442 = vmatprep.mubr.bf16.mxu1 %v1209_v13 }
 0x265   :  { %1443 = vmatmul.mubr.bf16.vlgmr.msra.gmra.mrb[12].mxu1 %v1208_v15 }
 0x266   :  { %1738 = vmatpush3.bf16.msra.mxu1 %v1969_v14  ;;  %1753 = vmatprep.mubr.msk.bf16.mxu1 %vm2109_vm0, %v2108_v52 }
 0x267   :  { %1739 = vmatprep.subr.bf16.mxu1 %v2108_v52 }
 0x26a   :  { %1740 = vmatpush3.bf16.msra.mxu1 %v1970_v16 }
 0x26b   :  { %1741 = vmatprep.subr.bf16.mxu1 %v2108_v52 }
 0x26e   :  { %1742 = vmatpush3.bf16.msra.mxu1 %v1971_v21 }
 0x26f   :  { %1743 = vmatprep.subr.bf16.mxu1 %v2108_v52 }
 0x272   :  { %1744 = vmatpush3.bf16.msra.mxu1 %v1972_v22 }
 0x273   :  { %1745 = vmatprep.subr.bf16.mxu1 %v2108_v52 }
 0x276   :  { %1746 = vmatpush3.bf16.msra.mxu1 %v1973_v24 }
 0x277   :  { %1747 = vmatprep.subr.bf16.mxu1 %v2108_v52 }
 0x27a   :  { %1748 = vmatpush3.bf16.msra.mxu1 %v1974_v17 }
 0x27b   :  { %1749 = vmatprep.subr.bf16.mxu1 %v2108_v52 }
 0x27e   :  { %1750 = vmatpush3.bf16.msra.mxu1 %v1975_v18 }
 0x27f   :  { %1751 = vmatprep.subr.bf16.mxu1 %v2108_v52 }
 0x282   :  { %1752 = vmatpush3.bf16.msra.mxu1 %v1976_v19 }
 0x285   :  { %1754 = vmatmul.mubr.bf16.vlgmr.msra.gmra.mrb[16].mxu1 %v1210_v23 }
 0x338   :  { %v1722_v25 = vpop.f32.mrb[12].mxu1 }
 0x339   :  { %v1723_v26 = vpop.f32.mrb[13].mxu1 }
 0x33a   :  { %v1724_v27 = vadd.f32 %v1723_v26, %v1722_v25  ;;  %v1725_v28 = vpop.f32.mrb[14].mxu1 }
 0x33b   :  { %v1726_v29 = vpop.f32.mrb[15].mxu1 }
 0x33c   :  { %v1445_v31 = vadd.f32 %v1724_v27, %v1637_v30 }
 0x358   :  { %v1484_v32 = vpop.f32.mrb[16].mxu1 }
 0x359   :  { %v1485_v33 = vadd.f32 %v1484_v32, %v1445_v31  ;;  %v1755_v34 = vpop.f32.mrb[17].mxu1 }
 0x35a   :  { %v1487_v35 = vpop.f32.mrb[18].mxu1 }
 0x35b   :  { %1977 = vtanh.f32 %v1485_v33  ;;  %v1756_v36 = vpop.f32.mrb[19].mxu1 }
 0x365   :  { %v1978_v37 = vpop.eup %1977 }
 0x366   :  { %1491 = vst [vmem:[#allocation10] sm:$0xff] %v1978_v37 }
 0x367   :  { %2078 = shalt.err (!%p2075_p8)
}
 0x368   :  { %s2079_s12 = scalar_lea.hbm %s2251_s7, 128 }
 0x369   :  { %p2080_p9 = scmp.ne.s32.totalorder %s2251_s7, %s2079_s12  ;;  %p2083_p10 = scmp.lt.u32.totalorder %s2079_s12, %s2251_s7 }
 0x36b   :  { %p2085_p11 = pnand %p2083_p10, %p2080_p9 }
 0x36d   :  { %2088 = shalt.err (!%p2085_p11)
}
 0x36e   :  { %1501 = dma.vmem_to_hbm [thread:$0]  %s1499_s9, 128, %s2251_s7, [#allocation4]  }
 0x36f   :  { %2095 = dma.done.wait [#allocation4], 128  }
 0x370   :  { %2096 = vsyncadd [#allocation4], 4294967168 }
 0x371   :  { %1505 = vsyncpa [#allocation3], 1 }
 0x372   :  { %1506 = vsyncpa [#allocation6], 1 }
 0x373   :  { %1507 = vsyncpa [#allocation9], 1 }
 0x374   :  { %1508 = vsyncpa [#allocation4], 1 }

</bundles_post_ra>
